<compile_context>
chip_gen: v5e
topology: v5e:2x2
jax: 0.10.0
libtpu: 0.0.40
codegen_flags: <defaults>
</compile_context>

<pallas_src>
import jax
import jax.numpy as jnp
from jax.experimental import pallas as pl
from jax.experimental.pallas import tpu as pltpu

# ----------------------------------------------------------------------------
# Module configuration (cfg.cloth_types in the original code).
# ----------------------------------------------------------------------------
CLOTH_TYPES = ["uppercloth", "coat", "pants", "skirts", "hair", "shoes"]
FEAT_DIM = 4096          # input_feat_dim for every `type`
N_CLOTH = len(CLOTH_TYPES)

# Fused column layout: [z_cut heads | z_style heads | cloth_cls | gender_cls]
_HEADS = []  # (name, out_dim)
for _ct in CLOTH_TYPES:
    if _ct != "shoes":                       # shoes has no z_cut head
        _HEADS.append((f"z_cut_{_ct}", 6))
for _ct in CLOTH_TYPES:
    if _ct == "shoes":
        _HEADS.append(("z_style_shoes", 4))
    else:
        _HEADS.append((f"z_style_{_ct}", 12))
_HEADS.append(("cloth_cls", N_CLOTH))
_HEADS.append(("gender_cls", 2))

HEAD_OFFSETS = {}
_off = 0
for _name, _dim in _HEADS:
    HEAD_OFFSETS[_name] = (_off, _dim)
    _off += _dim
TOTAL_OUT = _off                              # 30 + 64 + 6 + 2 = 102

CLS_OFF = HEAD_OFFSETS["cloth_cls"][0]        # 94
GEN_OFF = HEAD_OFFSETS["gender_cls"][0]       # 100

# Packed lane-dense output layout (single (B, 128) f32 slab):
SCORES_OUT_OFF = TOTAL_OUT                    # 102 .. 107 : sigmoid(cloth_cls)
GENDERS_OUT_OFF = TOTAL_OUT + N_CLOTH         # 108 .. 109 : softmax(gender)
OUT_PAD = 128                                 # lane-dense output / weight width
_PAD_COLS = OUT_PAD - (TOTAL_OUT + N_CLOTH + 2)   # 18 zero lanes

TILE_B_MAX = 256                              # batch tile (sublane-aligned)


def _round_up(x, m):
    return ((x + m - 1) // m) * m


# ----------------------------------------------------------------------------
# Pallas kernel: fused multi-head linear + sigmoid + exact 2-way softmax.
# ----------------------------------------------------------------------------
def clothnet_kernel(feat_ref, w_ref, b_ref, out_ref):
    # f32 -> bf16 cast fused into the kernel (one HBM read of the features).
    feat = feat_ref[...].astype(jnp.bfloat16)

    # (TB, 4096) bf16 @ (4096, 128) bf16 -> f32 on the MXU.
    y = jnp.dot(feat, w_ref[...], preferred_element_type=jnp.float32)
    y = y + b_ref[...]                               # broadcast bias (1, 128)

    raw = y[:, :TOTAL_OUT]                           # raw head logits (102)

    # cloth classification scores -> sigmoid
    scores = jax.nn.sigmoid(y[:, CLS_OFF:CLS_OFF + N_CLOTH])

    # gender logits -> exact 2-way softmax via sigmoid of the logit difference
    g0 = y[:, GEN_OFF:GEN_OFF + 1]
    g1 = y[:, GEN_OFF + 1:GEN_OFF + 2]
    p1 = jax.nn.sigmoid(g1 - g0)
    p0 = 1.0 - p1

    # Pack everything into one lane-dense (TB, 128) slab -> one unmasked,
    # full-width output store / DMA.
    pad = jnp.zeros((y.shape[0], _PAD_COLS), jnp.float32)
    out_ref[...] = jnp.concatenate([raw, scores, p0, p1, pad], axis=-1)


@jax.jit
def _clothnet_pallas(feat_f32, w_bf16, b_f32):
    B = feat_f32.shape[0]
    # Batch tile: at least 8 sublanes, at most TILE_B_MAX rows per grid step.
    tb = min(TILE_B_MAX, _round_up(B, 8))
    b_pad = _round_up(B, tb)
    if b_pad != B:
        feat_f32 = jnp.pad(feat_f32, ((0, b_pad - B), (0, 0)))
    grid = (b_pad // tb,)

    cost = pl.CostEstimate(
        flops=2 * b_pad * FEAT_DIM * OUT_PAD,
        transcendentals=b_pad * (N_CLOTH + 2),
        bytes_accessed=(b_pad * FEAT_DIM * 4            # features (f32 in)
                        + FEAT_DIM * OUT_PAD * 2        # weights (bf16)
                        + OUT_PAD * 4                   # bias
                        + b_pad * OUT_PAD * 4),         # packed output
    )

    packed = pl.pallas_call(
        clothnet_kernel,
        out_shape=jax.ShapeDtypeStruct((b_pad, OUT_PAD), jnp.float32),
        grid_spec=pltpu.PrefetchScalarGridSpec(
            num_scalar_prefetch=0,
            grid=grid,
            in_specs=[
                # features: tiled over batch, double-buffered by the pipeline
                pl.BlockSpec((tb, FEAT_DIM), lambda i: (i, 0)),
                # weights / bias: same block for every grid step -> VMEM-resident,
                # DMA'd once per call
                pl.BlockSpec((FEAT_DIM, OUT_PAD), lambda i: (0, 0)),
                pl.BlockSpec((1, OUT_PAD), lambda i: (0, 0)),
            ],
            out_specs=pl.BlockSpec((tb, OUT_PAD), lambda i: (i, 0)),
        ),
        compiler_params=pltpu.CompilerParams(
            dimension_semantics=("parallel",)),
        cost_estimate=cost,
    )(feat_f32, w_bf16, b_f32)

    return packed[:B]


def clothnet_forward(img_feat1, img_feat2, W_bf16, b):
    """Matches ClothNet.forward: returns (genders, scores, z_cuts, z_styles).

    img_feat1 is unused by the reference forward pass (kept for signature parity).
    """
    del img_feat1
    img_feat2 = img_feat2.astype(jnp.float32)        # img_feat2.to(torch.float32)
    B = img_feat2.shape[0]

    packed = _clothnet_pallas(img_feat2, W_bf16, b)

    raw = packed[:, :TOTAL_OUT]
    scores = packed[:, SCORES_OUT_OFF:SCORES_OUT_OFF + N_CLOTH]
    genders = packed[:, GENDERS_OUT_OFF:GENDERS_OUT_OFF + 2]

    z_cuts, z_styles = [], []
    for ct in CLOTH_TYPES:
        if ct == "shoes":
            z_cuts.append(jnp.zeros((B, 0), jnp.float32))
        else:
            off, d = HEAD_OFFSETS[f"z_cut_{ct}"]
            z_cuts.append(raw[:, off:off + d])
    for ct in CLOTH_TYPES:
        name = "z_style_shoes" if ct == "shoes" else f"z_style_{ct}"
        off, d = HEAD_OFFSETS[name]
        z_styles.append(raw[:, off:off + d])

    return genders, scores, z_cuts, z_styles


# ----------------------------------------------------------------------------
# Deterministic parameter construction (fused weight / bias, lane-padded to 128
# so the weight DMA rows are fully dense).
# ----------------------------------------------------------------------------
def build_params(key):
    W = jnp.zeros((FEAT_DIM, OUT_PAD), jnp.float32)
    b = jnp.zeros((1, OUT_PAD), jnp.float32)
    for name, dim in _HEADS:
        key, kw, kb = jax.random.split(key, 3)
        off, _ = HEAD_OFFSETS[name]
        w_head = 0.02 * jax.random.normal(kw, (FEAT_DIM, dim), jnp.float32)
        b_head = 0.01 * jax.random.normal(kb, (1, dim), jnp.float32)
        W = W.at[:, off:off + dim].set(w_head)
        b = b.at[:, off:off + dim].set(b_head)
    # Weights live in HBM as bf16 (halves the dominant weight traffic).
    return W.astype(jnp.bfloat16), b


# ----------------------------------------------------------------------------
# Pure-JAX reference with the same bf16 matmul numerics (for correctness check).
# ----------------------------------------------------------------------------
def reference_forward(img_feat2, W_bf16, b):
    x = img_feat2.astype(jnp.float32).astype(jnp.bfloat16)
    y = jnp.dot(x, W_bf16, preferred_element_type=jnp.float32) + b
    y = y[:, :TOTAL_OUT]
    scores = jax.nn.sigmoid(y[:, CLS_OFF:CLS_OFF + N_CLOTH])
    genders = jax.nn.softmax(y[:, GEN_OFF:GEN_OFF + 2], axis=-1)
    return y, scores, genders


if __name__ == "__main__":
    key = jax.random.PRNGKey(0)
    k1, k2, kp = jax.random.split(key, 3)

    B = 2
    img_feat1 = jax.random.normal(k1, (B, FEAT_DIM), jnp.float32)   # unused by fwd
    img_feat2 = jax.random.normal(k2, (B, FEAT_DIM), jnp.float32)

    W, b = build_params(kp)

    genders, scores, z_cuts, z_styles = clothnet_forward(img_feat1, img_feat2, W, b)
    jax.block_until_ready((genders, scores, z_cuts, z_styles))

    # sanity check against the pure-JAX reference (same bf16 matmul numerics;
    # gender path is now an exact softmax reformulation, so tolerance is tight).
    y_ref, scores_ref, genders_ref = reference_forward(img_feat2, W, b)
    assert jnp.allclose(scores, scores_ref, atol=2e-3, rtol=2e-3)
    assert jnp.allclose(genders, genders_ref, atol=2e-3, rtol=2e-3)
    assert jnp.allclose(jnp.sum(genders, axis=-1), 1.0, atol=1e-6)
    for ct, zc in zip(CLOTH_TYPES, z_cuts):
        if ct == "shoes":
            assert zc.shape == (B, 0)
        else:
            off, d = HEAD_OFFSETS[f"z_cut_{ct}"]
            assert jnp.allclose(zc, y_ref[:, off:off + d], atol=5e-3, rtol=5e-3)
    for ct, zs in zip(CLOTH_TYPES, z_styles):
        name = "z_style_shoes" if ct == "shoes" else f"z_style_{ct}"
        off, d = HEAD_OFFSETS[name]
        assert jnp.allclose(zs, y_ref[:, off:off + d], atol=5e-3, rtol=5e-3)

    print("KERNEL_OK")
</pallas_src>

<mosaic_0001>
module attributes {stable_mosaic.version = 11 : i64} {
  func.func @clothnet_kernel(%arg0: i32, %arg1: memref<8x4096xf32, #tpu.memory_space<vmem>>, %arg2: memref<4096x128xbf16, #tpu.memory_space<vmem>>, %arg3: memref<1x128xf32, #tpu.memory_space<vmem>>, %arg4: memref<8x128xf32, #tpu.memory_space<vmem>>) attributes {dimension_semantics = [#tpu.dimension_semantics<parallel>], iteration_bounds = array<i64: 1>, scalar_prefetch = 0 : i64, scratch_operands = 0 : i64, tpu.core_type = #tpu.core_type<tc>, window_params = [{transform_indices = @transform_0, window_bounds = array<i64: 8, 4096>}, {pipeline_mode = #tpu.pipeline_mode<synchronous>, transform_indices = @transform_1, window_bounds = array<i64: 4096, 128>}, {pipeline_mode = #tpu.pipeline_mode<synchronous>, transform_indices = @transform_2, window_bounds = array<i64: 1, 128>}, {transform_indices = @transform_3, window_bounds = array<i64: 8, 128>}]} {
    %c0 = arith.constant 0 : index
    %c0_0 = arith.constant 0 : index
    %0 = vector.load %arg1[%c0, %c0_0] : memref<8x4096xf32, #tpu.memory_space<vmem>>, vector<8x4096xf32>
    %1 = arith.truncf %0 : vector<8x4096xf32> to vector<8x4096xbf16>
    %c0_1 = arith.constant 0 : index
    %c0_2 = arith.constant 0 : index
    %2 = vector.load %arg2[%c0_1, %c0_2] : memref<4096x128xbf16, #tpu.memory_space<vmem>>, vector<4096x128xbf16>
    %cst = arith.constant dense<0.000000e+00> : vector<8x128xf32>
    %3 = tpu.matmul %1, %2, %cst {dimension_numbers = #tpu.dot_dimension_numbers<[1], [0], [0], [1], [0, 0, 1, 1], [], []>} : vector<8x4096xbf16>, vector<4096x128xbf16>, vector<8x128xf32> -> vector<8x128xf32>
    %c0_3 = arith.constant 0 : index
    %c0_4 = arith.constant 0 : index
    %4 = vector.load %arg3[%c0_3, %c0_4] : memref<1x128xf32, #tpu.memory_space<vmem>>, vector<1x128xf32>
    %5 = vector.broadcast %4 : vector<1x128xf32> to vector<8x128xf32>
    %6 = arith.addf %3, %5 : vector<8x128xf32>
    %7 = vector.extract_strided_slice %6 {offsets = [0, 0], sizes = [8, 102], strides = [1, 1]} : vector<8x128xf32> to vector<8x102xf32>
    %8 = vector.extract_strided_slice %6 {offsets = [0, 94], sizes = [8, 6], strides = [1, 1]} : vector<8x128xf32> to vector<8x6xf32>
    %9 = arith.negf %8 : vector<8x6xf32>
    %10 = math.exp %9 : vector<8x6xf32>
    %cst_5 = arith.constant 1.000000e+00 : f32
    %11 = vector.broadcast %cst_5 : f32 to vector<8x6xf32>
    %12 = arith.addf %11, %10 : vector<8x6xf32>
    %13 = arith.divf %11, %12 : vector<8x6xf32>
    %14 = vector.extract_strided_slice %6 {offsets = [0, 100], sizes = [8, 1], strides = [1, 1]} : vector<8x128xf32> to vector<8x1xf32>
    %15 = vector.extract_strided_slice %6 {offsets = [0, 101], sizes = [8, 1], strides = [1, 1]} : vector<8x128xf32> to vector<8x1xf32>
    %16 = arith.subf %15, %14 : vector<8x1xf32>
    %17 = arith.negf %16 : vector<8x1xf32>
    %18 = math.exp %17 : vector<8x1xf32>
    %cst_6 = arith.constant 1.000000e+00 : f32
    %19 = vector.broadcast %cst_6 : f32 to vector<8x1xf32>
    %20 = arith.addf %19, %18 : vector<8x1xf32>
    %21 = arith.divf %19, %20 : vector<8x1xf32>
    %cst_7 = arith.constant 1.000000e+00 : f32
    %22 = vector.broadcast %cst_7 : f32 to vector<8x1xf32>
    %23 = arith.subf %22, %21 : vector<8x1xf32>
    %cst_8 = arith.constant 0.000000e+00 : f32
    %24 = vector.broadcast %cst_8 : f32 to vector<8x18xf32>
    %25 = tpu.concatenate %7, %13, %23, %21, %24 in 1 : vector<8x102xf32>, vector<8x6xf32>, vector<8x1xf32>, vector<8x1xf32>, vector<8x18xf32> -> vector<8x128xf32>
    %c0_9 = arith.constant 0 : index
    %c0_10 = arith.constant 0 : index
    %26 = vector.load %arg4[%c0_9, %c0_10] : memref<8x128xf32, #tpu.memory_space<vmem>>, vector<8x128xf32>
    tpu.vector_store %arg4[%c0_9, %c0_10], %25 {strides = array<i32>} : memref<8x128xf32, #tpu.memory_space<vmem>>, vector<8x128xf32>,
    return
  }
  func.func @transform_0(%arg0: i32) -> (i32, i32) {
    %c0_i32 = arith.constant 0 : i32
    %c0_i32_0 = arith.constant 0 : i32
    return %arg0, %c0_i32 : i32, i32
  }
  func.func @transform_1(%arg0: i32) -> (i32, i32) {
    %c0_i32 = arith.constant 0 : i32
    %c0_i32_0 = arith.constant 0 : i32
    %c0_i32_1 = arith.constant 0 : i32
    return %c0_i32, %c0_i32_0 : i32, i32
  }
  func.func @transform_2(%arg0: i32) -> (i32, i32) {
    %c0_i32 = arith.constant 0 : i32
    %c0_i32_0 = arith.constant 0 : i32
    %c0_i32_1 = arith.constant 0 : i32
    return %c0_i32, %c0_i32_0 : i32, i32
  }
  func.func @transform_3(%arg0: i32) -> (i32, i32) {
    %c0_i32 = arith.constant 0 : i32
    %c0_i32_0 = arith.constant 0 : i32
    return %arg0, %c0_i32 : i32, i32
  }
}

</mosaic_0001>

<bundles_post_ra>
// kernel: _clothnet_pallas.1
= control target key start
LH: loop header
LB: loop body
LE: loop exit
PB: predicated region body
PF: predicated region fallthrough
CT: control target
= control target key end

     0   :  { %8 = vsyncpa [#allocation3], 0  ;;  %s3955_s15 = smov [#allocation2]   ;;  %s3956_s17 = smov 64   ;;  %s4092_s0 = inlined_call_operand.vmem [shape: f32[8,4096], index: 0, kind: input, shape index: {}]   ;;  %s4093_s1 = inlined_call_operand.hbm [shape: bf16[4096,128], index: 1, kind: input, shape index: {}]   ;;  %s4094_s2 = inlined_call_operand.vmem [shape: f32[1,128], index: 2, kind: input, shape index: {}]   ;;  %s4095_s3 = inlined_call_operand.vmem [shape: f32[8,128], index: 3, kind: output, shape index: {}]  }
   0x1   :  { %s15_s14 = sshll.u32 %s4093_s1, 4  ;;  %s17_s16 = sshll.u32 %s3955_s15, 4  ;;  %s16_s14 = int_to_ptr.hbm [resolvable:$true] %s15_s14  ;;  %s18_s16 = int_to_ptr.vmem [resolvable:$true] %s17_s16 }
   0x2   :  { %s3957_s18 = smov 4  }
   0x3   :  { %23 = dma.hbm_to_vmem [thread:$0]  %s16_s14, 32768, %s18_s16, [#allocation3], %s3956_s17, %s3956_s17, %s3957_s18  }
   0x4   :  { %3953 = dma.done.wait [#allocation3], 32768  }
   0x5   :  { %3954 = vsyncadd [#allocation3], 4294934528  ;;  %v3665_v0 = vld [vmem:[#allocation2 + $0x38] sm:$0xff]  ;;  %v3664_v4 = vld [vmem:[#allocation2 + $0x30] sm:$0xff]  ;;  %s3959_s27 = smov 8   ;;  %s3960_s28 = smov 7  }
   0x6   :  { %v3673_v1 = vld [vmem:[#allocation2 + $0x78] sm:$0xff]  ;;  %2146 = vmatpush.bf16.msra.mxu0 %v3665_v0  ;;  %v3672_v5 = vld [vmem:[#allocation2 + $0x70] sm:$0xff]  ;;  %v3663_v8 = vld [vmem:[#allocation2 + $0x28] sm:$0xff]  ;;  %vm2618_vm8 = vcmask 834560   ;;  %vm2620_vm9 = vcmask 883712   ;;  %vm2622_vm10 = vcmask 891904  }
   0x7   :  { %v3681_v2 = vld [vmem:[#allocation2 + $0xb8] sm:$0xff]  ;;  %2159 = vmatpush.bf16.msra.mxu1 %v3673_v1  ;;  %v3680_v6 = vld [vmem:[#allocation2 + $0xb0] sm:$0xff]  ;;  %v3671_v9 = vld [vmem:[#allocation2 + $0x68] sm:$0xff]  ;;  %vm2624_vm11 = vcmask 900096  }
   0x8   :  { %v3689_v3 = vld [vmem:[#allocation2 + $0xf8] sm:$0xff]  ;;  %2172 = vmatpush.bf16.msra.mxu2 %v3681_v2  ;;  %v3688_v7 = vld [vmem:[#allocation2 + $0xf0] sm:$0xff]  ;;  %v3679_v10 = vld [vmem:[#allocation2 + $0xa8] sm:$0xff] }
   0x9   :  { %2185 = vmatpush.bf16.msra.mxu3 %v3689_v3  ;;  %v3687_v11 = vld [vmem:[#allocation2 + $0xe8] sm:$0xff]  ;;  %v3662_v12 = vld [vmem:[#allocation2 + $0x20] sm:$0xff]  ;;  %v3661_v16 = vld [vmem:[#allocation2 + $0x18] sm:$0xff] }
   0xa   :  { %2147 = vmatpush.bf16.msra.mxu0 %v3664_v4  ;;  %v3670_v13 = vld [vmem:[#allocation2 + $0x60] sm:$0xff]  ;;  %v3669_v17 = vld [vmem:[#allocation2 + $0x58] sm:$0xff]  ;;  %v3660_v20 = vld [vmem:[#allocation2 + $0x10] sm:$0xff] }
   0xb   :  { %2160 = vmatpush.bf16.msra.mxu1 %v3672_v5  ;;  %v3678_v14 = vld [vmem:[#allocation2 + $0xa0] sm:$0xff]  ;;  %v3677_v18 = vld [vmem:[#allocation2 + $0x98] sm:$0xff]  ;;  %v3668_v21 = vld [vmem:[#allocation2 + $0x50] sm:$0xff] }
   0xc   :  { %2173 = vmatpush.bf16.msra.mxu2 %v3680_v6  ;;  %v3686_v15 = vld [vmem:[#allocation2 + $0xe0] sm:$0xff]  ;;  %v3685_v19 = vld [vmem:[#allocation2 + $0xd8] sm:$0xff]  ;;  %v3676_v22 = vld [vmem:[#allocation2 + $0x90] sm:$0xff] }
   0xd   :  { %2186 = vmatpush.bf16.msra.mxu3 %v3688_v7  ;;  %v3684_v23 = vld [vmem:[#allocation2 + $0xd0] sm:$0xff]  ;;  %v3659_v24 = vld [vmem:[#allocation2 + $0x8] sm:$0xff]  ;;  %v3658_v28 = vld [vmem:[#allocation2] sm:$0xff] }
   0xe   :  { %2148 = vmatpush.bf16.msra.mxu0 %v3663_v8  ;;  %v3667_v25 = vld [vmem:[#allocation2 + $0x48] sm:$0xff]  ;;  %v3666_v29 = vld [vmem:[#allocation2 + $0x40] sm:$0xff]  ;;  %v3697_v32 = vld [vmem:[#allocation2 + $0x138] sm:$0xff] }
   0xf   :  { %2161 = vmatpush.bf16.msra.mxu1 %v3671_v9  ;;  %v3675_v26 = vld [vmem:[#allocation2 + $0x88] sm:$0xff]  ;;  %v3674_v30 = vld [vmem:[#allocation2 + $0x80] sm:$0xff]  ;;  %v32_v33 = vld [vmem:[%s4092_s0 + $0x10] sm:$0xff] }
  0x10   :  { %2174 = vmatpush.bf16.msra.mxu2 %v3679_v10  ;;  %v3683_v27 = vld [vmem:[#allocation2 + $0xc8] sm:$0xff]  ;;  %v3682_v31 = vld [vmem:[#allocation2 + $0xc0] sm:$0xff]  ;;  %v3705_v35 = vld [vmem:[#allocation2 + $0x178] sm:$0xff]  ;;  %v64_v40 = vpack.c.bf16 %v32_v33, %v32_v33 }
  0x11   :  { %2187 = vmatpush.bf16.msra.mxu3 %v3687_v11  ;;  %v30_v34 = vld [vmem:[%s4092_s0] sm:$0xff]  ;;  %v33_v36 = vld [vmem:[%s4092_s0 + $0x18] sm:$0xff]  ;;  %v31_v37 = vld [vmem:[%s4092_s0 + $0x8] sm:$0xff] }
  0x12   :  { %2149 = vmatpush.bf16.msra.mxu0 %v3662_v12  ;;  %v3713_v38 = vld [vmem:[#allocation2 + $0x1b8] sm:$0xff]  ;;  %v62_v41 = vpack.c.bf16 %v30_v34, %v30_v34  ;;  %v65_v42 = vpack.c.bf16 %v33_v36, %v33_v36  ;;  %v63_v43 = vpack.c.bf16 %v31_v37, %v31_v37  ;;  %v3696_v44 = vld [vmem:[#allocation2 + $0x130] sm:$0xff]  ;;  %v3695_v48 = vld [vmem:[#allocation2 + $0x128] sm:$0xff] }
  0x13   :  { %2162 = vmatpush.bf16.msra.mxu1 %v3670_v13  ;;  %v3721_v39 = vld [vmem:[#allocation2 + $0x1f8] sm:$0xff]  ;;  %v3704_v45 = vld [vmem:[#allocation2 + $0x170] sm:$0xff]  ;;  %v3703_v49 = vld [vmem:[#allocation2 + $0x168] sm:$0xff] }
  0x14   :  { %2175 = vmatpush.bf16.msra.mxu2 %v3678_v14  ;;  %v3712_v46 = vld [vmem:[#allocation2 + $0x1b0] sm:$0xff]  ;;  %v3711_v50 = vld [vmem:[#allocation2 + $0x1a8] sm:$0xff]  ;;  %v3694_v52 = vld [vmem:[#allocation2 + $0x120] sm:$0xff] }
  0x15   :  { %2188 = vmatpush.bf16.msra.mxu3 %v3686_v15  ;;  %v3720_v47 = vld [vmem:[#allocation2 + $0x1f0] sm:$0xff]  ;;  %v3719_v51 = vld [vmem:[#allocation2 + $0x1e8] sm:$0xff]  ;;  %v3702_v53 = vld [vmem:[#allocation2 + $0x160] sm:$0xff] }
  0x16   :  { %2150 = vmatpush.bf16.msra.mxu0 %v3661_v16  ;;  %v3710_v54 = vld [vmem:[#allocation2 + $0x1a0] sm:$0xff]  ;;  %v3693_v56 = vld [vmem:[#allocation2 + $0x118] sm:$0xff]  ;;  %v3692_v60 = vld [vmem:[#allocation2 + $0x110] sm:$0xff] }
  0x17   :  { %2163 = vmatpush.bf16.msra.mxu1 %v3669_v17  ;;  %v3718_v55 = vld [vmem:[#allocation2 + $0x1e0] sm:$0xff]  ;;  %v3701_v57 = vld [vmem:[#allocation2 + $0x158] sm:$0xff]  ;;  %v3700_v61 = vld [vmem:[#allocation2 + $0x150] sm:$0xff] }
  0x18   :  { %2176 = vmatpush.bf16.msra.mxu2 %v3677_v18  ;;  %v3709_v58 = vld [vmem:[#allocation2 + $0x198] sm:$0xff]  ;;  %v3708_v62 = vld [vmem:[#allocation2 + $0x190] sm:$0xff]  ;;  %v3691_v0 = vld [vmem:[#allocation2 + $0x108] sm:$0xff] }
  0x19   :  { %2189 = vmatpush.bf16.msra.mxu3 %v3685_v19  ;;  %v3717_v59 = vld [vmem:[#allocation2 + $0x1d8] sm:$0xff]  ;;  %v3716_v63 = vld [vmem:[#allocation2 + $0x1d0] sm:$0xff]  ;;  %v3699_v1 = vld [vmem:[#allocation2 + $0x148] sm:$0xff] }
  0x1a   :  { %2151 = vmatpush.bf16.msra.mxu0 %v3660_v20  ;;  %v3707_v2 = vld [vmem:[#allocation2 + $0x188] sm:$0xff]  ;;  %v3690_v4 = vld [vmem:[#allocation2 + $0x100] sm:$0xff]  ;;  %v3729_v8 = vld [vmem:[#allocation2 + $0x238] sm:$0xff] }
  0x1b   :  { %2164 = vmatpush.bf16.msra.mxu1 %v3668_v21  ;;  %v3715_v3 = vld [vmem:[#allocation2 + $0x1c8] sm:$0xff]  ;;  %v3698_v5 = vld [vmem:[#allocation2 + $0x140] sm:$0xff]  ;;  %v36_v9 = vld [vmem:[%s4092_s0 + $0x30] sm:$0xff] }
  0x1c   :  { %2177 = vmatpush.bf16.msra.mxu2 %v3676_v22  ;;  %v3706_v6 = vld [vmem:[#allocation2 + $0x180] sm:$0xff]  ;;  %v3737_v11 = vld [vmem:[#allocation2 + $0x278] sm:$0xff]  ;;  %v35_v13 = vld [vmem:[%s4092_s0 + $0x28] sm:$0xff]  ;;  %v68_v16 = vpack.c.bf16 %v36_v9, %v36_v9 }
  0x1d   :  { %2190 = vmatpush.bf16.msra.mxu3 %v3684_v23  ;;  %v3714_v7 = vld [vmem:[#allocation2 + $0x1c0] sm:$0xff]  ;;  %v37_v12 = vld [vmem:[%s4092_s0 + $0x38] sm:$0xff]  ;;  %v67_v19 = vpack.c.bf16 %v35_v13, %v35_v13  ;;  %v3728_v20 = vld [vmem:[#allocation2 + $0x230] sm:$0xff] }
  0x1e   :  { %2152 = vmatpush.bf16.msra.mxu0 %v3659_v24  ;;  %v34_v10 = vld [vmem:[%s4092_s0 + $0x20] sm:$0xff]  ;;  %v3745_v14 = vld [vmem:[#allocation2 + $0x2b8] sm:$0xff]  ;;  %v69_v18 = vpack.c.bf16 %v37_v12, %v37_v12  ;;  %v3736_v21 = vld [vmem:[#allocation2 + $0x270] sm:$0xff] }
  0x1f   :  { %2165 = vmatpush.bf16.msra.mxu1 %v3667_v25  ;;  %v3753_v15 = vld [vmem:[#allocation2 + $0x2f8] sm:$0xff]  ;;  %v66_v17 = vpack.c.bf16 %v34_v10, %v34_v10  ;;  %v3744_v22 = vld [vmem:[#allocation2 + $0x2b0] sm:$0xff]  ;;  %v3727_v24 = vld [vmem:[#allocation2 + $0x228] sm:$0xff] }
  0x20   :  { %2178 = vmatpush.bf16.msra.mxu2 %v3675_v26  ;;  %v3752_v23 = vld [vmem:[#allocation2 + $0x2f0] sm:$0xff]  ;;  %v3735_v25 = vld [vmem:[#allocation2 + $0x268] sm:$0xff]  ;;  %v3733_v33 = vld [vmem:[#allocation2 + $0x258] sm:$0xff] }
  0x21   :  { %2191 = vmatpush.bf16.msra.mxu3 %v3683_v27  ;;  %v3743_v26 = vld [vmem:[#allocation2 + $0x2a8] sm:$0xff]  ;;  %v3741_v34 = vld [vmem:[#allocation2 + $0x298] sm:$0xff]  ;;  %v3724_v36 = vld [vmem:[#allocation2 + $0x210] sm:$0xff] }
  0x22   :  { %2153 = vmatpush.bf16.msra.mxu0 %v3658_v28  ;;  %v3751_v27 = vld [vmem:[#allocation2 + $0x2e8] sm:$0xff]  ;;  %v3726_v28 = vld [vmem:[#allocation2 + $0x220] sm:$0xff]  ;;  %v3732_v37 = vld [vmem:[#allocation2 + $0x250] sm:$0xff] }
  0x23   :  { %2166 = vmatpush.bf16.msra.mxu1 %v3666_v29  ;;  %v3734_v29 = vld [vmem:[#allocation2 + $0x260] sm:$0xff]  ;;  %v3765_v9 = vld [vmem:[#allocation2 + $0x358] sm:$0xff]  ;;  %v3756_v12 = vld [vmem:[#allocation2 + $0x310] sm:$0xff] }
  0x24   :  { %2179 = vmatpush.bf16.msra.mxu2 %v3674_v30  ;;  %v3742_v30 = vld [vmem:[#allocation2 + $0x2a0] sm:$0xff]  ;;  %v3773_v10 = vld [vmem:[#allocation2 + $0x398] sm:$0xff]  ;;  %v3764_v13 = vld [vmem:[#allocation2 + $0x350] sm:$0xff] }
  0x25   :  { %2192 = vmatpush.bf16.msra.mxu3 %v3682_v31  ;;  %2154 = vmatmul.bf16.vlgmr.msra.gmra.mxu0 %v62_v41  ;;  %v3750_v31 = vld [vmem:[#allocation2 + $0x2e0] sm:$0xff]  ;;  %v3731_v41 = vld [vmem:[#allocation2 + $0x248] sm:$0xff] }
  0x26   :  { %2198 = vmatpush.bf16.msrb.mxu0 %v3697_v32  ;;  %2167 = vmatmul.bf16.vlgmr.msra.gmra.mxu1 %v63_v43  ;;  %v3725_v32 = vld [vmem:[#allocation2 + $0x218] sm:$0xff]  ;;  %v3747_v43 = vld [vmem:[#allocation2 + $0x2c8] sm:$0xff] }
  0x27   :  { %2211 = vmatpush.bf16.msrb.mxu1 %v3705_v35  ;;  %2180 = vmatmul.bf16.vlgmr.msra.gmra.mxu2 %v64_v40  ;;  %v3749_v35 = vld [vmem:[#allocation2 + $0x2d8] sm:$0xff]  ;;  %v3723_v40 = vld [vmem:[#allocation2 + $0x208] sm:$0xff] }
  0x28   :  { %2224 = vmatpush.bf16.msrb.mxu2 %v3713_v38  ;;  %2193 = vmatmul.bf16.vlgmr.msra.gmra.mxu3 %v65_v42  ;;  %v3740_v38 = vld [vmem:[#allocation2 + $0x290] sm:$0xff]  ;;  %v3739_v42 = vld [vmem:[#allocation2 + $0x288] sm:$0xff] }
  0x29   :  { %2237 = vmatpush.bf16.msrb.mxu3 %v3721_v39  ;;  %v3748_v39 = vld [vmem:[#allocation2 + $0x2d0] sm:$0xff] }
  0x2a   :  { %2199 = vmatpush.bf16.msrb.mxu0 %v3696_v44  ;;  %v3722_v44 = vld [vmem:[#allocation2 + $0x200] sm:$0xff] }
  0x2b   :  { %2212 = vmatpush.bf16.msrb.mxu1 %v3704_v45  ;;  %v3730_v45 = vld [vmem:[#allocation2 + $0x240] sm:$0xff] }
  0x2c   :  { %2225 = vmatpush.bf16.msrb.mxu2 %v3712_v46  ;;  %v3738_v46 = vld [vmem:[#allocation2 + $0x280] sm:$0xff] }
  0x2d   :  { %2238 = vmatpush.bf16.msrb.mxu3 %v3720_v47  ;;  %v3746_v47 = vld [vmem:[#allocation2 + $0x2c0] sm:$0xff] }
  0x2e   :  { %2200 = vmatpush.bf16.msrb.mxu0 %v3695_v48  ;;  %v3761_v48 = vld [vmem:[#allocation2 + $0x338] sm:$0xff] }
  0x2f   :  { %2213 = vmatpush.bf16.msrb.mxu1 %v3703_v49  ;;  %v38_v49 = vld [vmem:[%s4092_s0 + $0x40] sm:$0xff] }
  0x30   :  { %2226 = vmatpush.bf16.msrb.mxu2 %v3711_v50  ;;  %v40_v50 = vld [vmem:[%s4092_s0 + $0x50] sm:$0xff] }
  0x31   :  { %2239 = vmatpush.bf16.msrb.mxu3 %v3719_v51  ;;  %v3769_v51 = vld [vmem:[#allocation2 + $0x378] sm:$0xff] }
  0x32   :  { %2201 = vmatpush.bf16.msrb.mxu0 %v3694_v52  ;;  %v39_v52 = vld [vmem:[%s4092_s0 + $0x48] sm:$0xff] }
  0x33   :  { %2214 = vmatpush.bf16.msrb.mxu1 %v3702_v53  ;;  %v41_v53 = vld [vmem:[%s4092_s0 + $0x58] sm:$0xff] }
  0x34   :  { %2227 = vmatpush.bf16.msrb.mxu2 %v3710_v54  ;;  %v3777_v54 = vld [vmem:[#allocation2 + $0x3b8] sm:$0xff] }
  0x35   :  { %2240 = vmatpush.bf16.msrb.mxu3 %v3718_v55  ;;  %v3785_v55 = vld [vmem:[#allocation2 + $0x3f8] sm:$0xff] }
  0x36   :  { %2202 = vmatpush.bf16.msrb.mxu0 %v3693_v56  ;;  %v70_v56 = vpack.c.bf16 %v38_v49, %v38_v49  ;;  %v3797_v49 = vld [vmem:[#allocation2 + $0x458] sm:$0xff] }
  0x37   :  { %2215 = vmatpush.bf16.msrb.mxu1 %v3701_v57  ;;  %v72_v57 = vpack.c.bf16 %v40_v50, %v40_v50  ;;  %v3805_v50 = vld [vmem:[#allocation2 + $0x498] sm:$0xff] }
  0x38   :  { %2228 = vmatpush.bf16.msrb.mxu2 %v3709_v58  ;;  %v71_v58 = vpack.c.bf16 %v39_v52, %v39_v52  ;;  %v3788_v52 = vld [vmem:[#allocation2 + $0x410] sm:$0xff] }
  0x39   :  { %2241 = vmatpush.bf16.msrb.mxu3 %v3717_v59  ;;  %v73_v59 = vpack.c.bf16 %v41_v53, %v41_v53  ;;  %v3796_v53 = vld [vmem:[#allocation2 + $0x450] sm:$0xff] }
  0x3a   :  { %2203 = vmatpush.bf16.msrb.mxu0 %v3692_v60  ;;  %v3760_v60 = vld [vmem:[#allocation2 + $0x330] sm:$0xff] }
  0x3b   :  { %2216 = vmatpush.bf16.msrb.mxu1 %v3700_v61  ;;  %v3768_v61 = vld [vmem:[#allocation2 + $0x370] sm:$0xff] }
  0x3c   :  { %2229 = vmatpush.bf16.msrb.mxu2 %v3708_v62  ;;  %v3776_v62 = vld [vmem:[#allocation2 + $0x3b0] sm:$0xff] }
  0x3d   :  { %2242 = vmatpush.bf16.msrb.mxu3 %v3716_v63  ;;  %v3784_v63 = vld [vmem:[#allocation2 + $0x3f0] sm:$0xff] }
  0x3e   :  { %2204 = vmatpush.bf16.msrb.mxu0 %v3691_v0  ;;  %v3759_v0 = vld [vmem:[#allocation2 + $0x328] sm:$0xff] }
  0x3f   :  { %2217 = vmatpush.bf16.msrb.mxu1 %v3699_v1  ;;  %v3767_v1 = vld [vmem:[#allocation2 + $0x368] sm:$0xff] }
  0x40   :  { %2230 = vmatpush.bf16.msrb.mxu2 %v3707_v2  ;;  %v3775_v2 = vld [vmem:[#allocation2 + $0x3a8] sm:$0xff] }
  0x41   :  { %2243 = vmatpush.bf16.msrb.mxu3 %v3715_v3  ;;  %v3783_v3 = vld [vmem:[#allocation2 + $0x3e8] sm:$0xff] }
  0x42   :  { %2205 = vmatpush.bf16.msrb.mxu0 %v3690_v4  ;;  %v3758_v4 = vld [vmem:[#allocation2 + $0x320] sm:$0xff] }
  0x43   :  { %2218 = vmatpush.bf16.msrb.mxu1 %v3698_v5  ;;  %v3766_v5 = vld [vmem:[#allocation2 + $0x360] sm:$0xff] }
  0x44   :  { %2231 = vmatpush.bf16.msrb.mxu2 %v3706_v6  ;;  %v3774_v6 = vld [vmem:[#allocation2 + $0x3a0] sm:$0xff] }
  0x45   :  { %2244 = vmatpush.bf16.msrb.mxu3 %v3714_v7  ;;  %2206 = vmatmul.bf16.vlgmr.msrb.gmra.mxu0 %v66_v17  ;;  %v3782_v7 = vld [vmem:[#allocation2 + $0x3e0] sm:$0xff]  ;;  %v3763_v17 = vld [vmem:[#allocation2 + $0x348] sm:$0xff] }
  0x46   :  { %2250 = vmatpush.bf16.msra.mxu0 %v3729_v8  ;;  %2219 = vmatmul.bf16.vlgmr.msrb.gmra.mxu1 %v67_v19  ;;  %v3757_v8 = vld [vmem:[#allocation2 + $0x318] sm:$0xff]  ;;  %v3779_v19 = vld [vmem:[#allocation2 + $0x3c8] sm:$0xff] }
  0x47   :  { %2263 = vmatpush.bf16.msra.mxu1 %v3737_v11  ;;  %2232 = vmatmul.bf16.vlgmr.msrb.gmra.mxu2 %v68_v16  ;;  %v3781_v11 = vld [vmem:[#allocation2 + $0x3d8] sm:$0xff]  ;;  %v3755_v16 = vld [vmem:[#allocation2 + $0x308] sm:$0xff] }
  0x48   :  { %2276 = vmatpush.bf16.msra.mxu2 %v3745_v14  ;;  %2245 = vmatmul.bf16.vlgmr.msrb.gmra.mxu3 %v69_v18  ;;  %v3772_v14 = vld [vmem:[#allocation2 + $0x390] sm:$0xff]  ;;  %v3771_v18 = vld [vmem:[#allocation2 + $0x388] sm:$0xff] }
  0x49   :  { %2289 = vmatpush.bf16.msra.mxu3 %v3753_v15  ;;  %v3780_v15 = vld [vmem:[#allocation2 + $0x3d0] sm:$0xff] }
  0x4a   :  { %2251 = vmatpush.bf16.msra.mxu0 %v3728_v20  ;;  %v3754_v20 = vld [vmem:[#allocation2 + $0x300] sm:$0xff] }
  0x4b   :  { %2264 = vmatpush.bf16.msra.mxu1 %v3736_v21  ;;  %v3762_v21 = vld [vmem:[#allocation2 + $0x340] sm:$0xff] }
  0x4c   :  { %2277 = vmatpush.bf16.msra.mxu2 %v3744_v22  ;;  %v3770_v22 = vld [vmem:[#allocation2 + $0x380] sm:$0xff] }
  0x4d   :  { %2290 = vmatpush.bf16.msra.mxu3 %v3752_v23  ;;  %v3778_v23 = vld [vmem:[#allocation2 + $0x3c0] sm:$0xff] }
  0x4e   :  { %2252 = vmatpush.bf16.msra.mxu0 %v3727_v24  ;;  %v3793_v24 = vld [vmem:[#allocation2 + $0x438] sm:$0xff] }
  0x4f   :  { %2265 = vmatpush.bf16.msra.mxu1 %v3735_v25  ;;  %v42_v25 = vld [vmem:[%s4092_s0 + $0x60] sm:$0xff] }
  0x50   :  { %2278 = vmatpush.bf16.msra.mxu2 %v3743_v26  ;;  %v44_v26 = vld [vmem:[%s4092_s0 + $0x70] sm:$0xff] }
  0x51   :  { %2291 = vmatpush.bf16.msra.mxu3 %v3751_v27  ;;  %v3801_v27 = vld [vmem:[#allocation2 + $0x478] sm:$0xff] }
  0x52   :  { %2253 = vmatpush.bf16.msra.mxu0 %v3726_v28  ;;  %v43_v28 = vld [vmem:[%s4092_s0 + $0x68] sm:$0xff] }
  0x53   :  { %2266 = vmatpush.bf16.msra.mxu1 %v3734_v29  ;;  %v45_v29 = vld [vmem:[%s4092_s0 + $0x78] sm:$0xff] }
  0x54   :  { %2279 = vmatpush.bf16.msra.mxu2 %v3742_v30  ;;  %v3809_v30 = vld [vmem:[#allocation2 + $0x4b8] sm:$0xff] }
  0x55   :  { %2292 = vmatpush.bf16.msra.mxu3 %v3750_v31  ;;  %v3817_v31 = vld [vmem:[#allocation2 + $0x4f8] sm:$0xff] }
  0x56   :  { %2254 = vmatpush.bf16.msra.mxu0 %v3725_v32  ;;  %v74_v32 = vpack.c.bf16 %v42_v25, %v42_v25 }
  0x57   :  { %2267 = vmatpush.bf16.msra.mxu1 %v3733_v33  ;;  %v76_v33 = vpack.c.bf16 %v44_v26, %v44_v26  ;;  %v3838_v26 = vld [vmem:[#allocation2 + $0x5a0] sm:$0xff] }
  0x58   :  { %2280 = vmatpush.bf16.msra.mxu2 %v3741_v34  ;;  %v75_v34 = vpack.c.bf16 %v43_v28, %v43_v28 }
  0x59   :  { %2293 = vmatpush.bf16.msra.mxu3 %v3749_v35  ;;  %v77_v35 = vpack.c.bf16 %v45_v29, %v45_v29  ;;  %v3821_v29 = vld [vmem:[#allocation2 + $0x518] sm:$0xff] }
  0x5a   :  { %2255 = vmatpush.bf16.msra.mxu0 %v3724_v36  ;;  %v3792_v36 = vld [vmem:[#allocation2 + $0x430] sm:$0xff] }
  0x5b   :  { %2268 = vmatpush.bf16.msra.mxu1 %v3732_v37  ;;  %v3800_v37 = vld [vmem:[#allocation2 + $0x470] sm:$0xff] }
  0x5c   :  { %2281 = vmatpush.bf16.msra.mxu2 %v3740_v38  ;;  %v3808_v38 = vld [vmem:[#allocation2 + $0x4b0] sm:$0xff] }
  0x5d   :  { %2294 = vmatpush.bf16.msra.mxu3 %v3748_v39  ;;  %v3816_v39 = vld [vmem:[#allocation2 + $0x4f0] sm:$0xff] }
  0x5e   :  { %2256 = vmatpush.bf16.msra.mxu0 %v3723_v40  ;;  %v3791_v40 = vld [vmem:[#allocation2 + $0x428] sm:$0xff] }
  0x5f   :  { %2269 = vmatpush.bf16.msra.mxu1 %v3731_v41  ;;  %v3799_v41 = vld [vmem:[#allocation2 + $0x468] sm:$0xff] }
  0x60   :  { %2282 = vmatpush.bf16.msra.mxu2 %v3739_v42  ;;  %v3807_v42 = vld [vmem:[#allocation2 + $0x4a8] sm:$0xff] }
  0x61   :  { %2295 = vmatpush.bf16.msra.mxu3 %v3747_v43  ;;  %v3815_v43 = vld [vmem:[#allocation2 + $0x4e8] sm:$0xff] }
  0x62   :  { %2257 = vmatpush.bf16.msra.mxu0 %v3722_v44  ;;  %v3790_v44 = vld [vmem:[#allocation2 + $0x420] sm:$0xff] }
  0x63   :  { %2270 = vmatpush.bf16.msra.mxu1 %v3730_v45  ;;  %v3798_v45 = vld [vmem:[#allocation2 + $0x460] sm:$0xff] }
  0x64   :  { %2283 = vmatpush.bf16.msra.mxu2 %v3738_v46  ;;  %v3806_v46 = vld [vmem:[#allocation2 + $0x4a0] sm:$0xff] }
  0x65   :  { %2296 = vmatpush.bf16.msra.mxu3 %v3746_v47  ;;  %2258 = vmatmul.bf16.vlgmr.msra.gmra.mxu0 %v70_v56  ;;  %v3814_v47 = vld [vmem:[#allocation2 + $0x4e0] sm:$0xff]  ;;  %v3787_v56 = vld [vmem:[#allocation2 + $0x408] sm:$0xff] }
  0x66   :  { %2302 = vmatpush.bf16.msrb.mxu0 %v3761_v48  ;;  %2271 = vmatmul.bf16.vlgmr.msra.gmra.mxu1 %v71_v58  ;;  %v3789_v48 = vld [vmem:[#allocation2 + $0x418] sm:$0xff]  ;;  %v3803_v58 = vld [vmem:[#allocation2 + $0x488] sm:$0xff] }
  0x67   :  { %2315 = vmatpush.bf16.msrb.mxu1 %v3769_v51  ;;  %2284 = vmatmul.bf16.vlgmr.msra.gmra.mxu2 %v72_v57  ;;  %v3813_v51 = vld [vmem:[#allocation2 + $0x4d8] sm:$0xff]  ;;  %v3795_v57 = vld [vmem:[#allocation2 + $0x448] sm:$0xff] }
  0x68   :  { %2328 = vmatpush.bf16.msrb.mxu2 %v3777_v54  ;;  %2297 = vmatmul.bf16.vlgmr.msra.gmra.mxu3 %v73_v59  ;;  %v3804_v54 = vld [vmem:[#allocation2 + $0x490] sm:$0xff]  ;;  %v3811_v59 = vld [vmem:[#allocation2 + $0x4c8] sm:$0xff] }
  0x69   :  { %2341 = vmatpush.bf16.msrb.mxu3 %v3785_v55  ;;  %v3812_v55 = vld [vmem:[#allocation2 + $0x4d0] sm:$0xff] }
  0x6a   :  { %2303 = vmatpush.bf16.msrb.mxu0 %v3760_v60  ;;  %v3786_v60 = vld [vmem:[#allocation2 + $0x400] sm:$0xff] }
  0x6b   :  { %2316 = vmatpush.bf16.msrb.mxu1 %v3768_v61  ;;  %v3794_v61 = vld [vmem:[#allocation2 + $0x440] sm:$0xff] }
  0x6c   :  { %2329 = vmatpush.bf16.msrb.mxu2 %v3776_v62  ;;  %v3802_v62 = vld [vmem:[#allocation2 + $0x480] sm:$0xff] }
  0x6d   :  { %2342 = vmatpush.bf16.msrb.mxu3 %v3784_v63  ;;  %v3810_v63 = vld [vmem:[#allocation2 + $0x4c0] sm:$0xff] }
  0x6e   :  { %2304 = vmatpush.bf16.msrb.mxu0 %v3759_v0  ;;  %v3825_v0 = vld [vmem:[#allocation2 + $0x538] sm:$0xff] }
  0x6f   :  { %2317 = vmatpush.bf16.msrb.mxu1 %v3767_v1  ;;  %v46_v1 = vld [vmem:[%s4092_s0 + $0x80] sm:$0xff] }
  0x70   :  { %2330 = vmatpush.bf16.msrb.mxu2 %v3775_v2  ;;  %v48_v2 = vld [vmem:[%s4092_s0 + $0x90] sm:$0xff] }
  0x71   :  { %2343 = vmatpush.bf16.msrb.mxu3 %v3783_v3  ;;  %v3833_v3 = vld [vmem:[#allocation2 + $0x578] sm:$0xff] }
  0x72   :  { %2305 = vmatpush.bf16.msrb.mxu0 %v3758_v4  ;;  %v47_v4 = vld [vmem:[%s4092_s0 + $0x88] sm:$0xff] }
  0x73   :  { %2318 = vmatpush.bf16.msrb.mxu1 %v3766_v5  ;;  %v49_v5 = vld [vmem:[%s4092_s0 + $0x98] sm:$0xff] }
  0x74   :  { %2331 = vmatpush.bf16.msrb.mxu2 %v3774_v6  ;;  %v3841_v6 = vld [vmem:[#allocation2 + $0x5b8] sm:$0xff] }
  0x75   :  { %2344 = vmatpush.bf16.msrb.mxu3 %v3782_v7  ;;  %v3849_v7 = vld [vmem:[#allocation2 + $0x5f8] sm:$0xff] }
  0x76   :  { %2306 = vmatpush.bf16.msrb.mxu0 %v3757_v8  ;;  %v78_v8 = vpack.c.bf16 %v46_v1, %v46_v1  ;;  %v3856_v1 = vld [vmem:[#allocation2 + $0x630] sm:$0xff] }
  0x77   :  { %2319 = vmatpush.bf16.msrb.mxu1 %v3765_v9  ;;  %v80_v9 = vpack.c.bf16 %v48_v2, %v48_v2  ;;  %v3864_v2 = vld [vmem:[#allocation2 + $0x670] sm:$0xff] }
  0x78   :  { %2332 = vmatpush.bf16.msrb.mxu2 %v3773_v10  ;;  %v79_v10 = vpack.c.bf16 %v47_v4, %v47_v4  ;;  %v3880_v4 = vld [vmem:[#allocation2 + $0x6f0] sm:$0xff] }
  0x79   :  { %2345 = vmatpush.bf16.msrb.mxu3 %v3781_v11  ;;  %v81_v11 = vpack.c.bf16 %v49_v5, %v49_v5  ;;  %v3855_v5 = vld [vmem:[#allocation2 + $0x628] sm:$0xff] }
  0x7a   :  { %2307 = vmatpush.bf16.msrb.mxu0 %v3756_v12  ;;  %v3824_v12 = vld [vmem:[#allocation2 + $0x530] sm:$0xff] }
  0x7b   :  { %2320 = vmatpush.bf16.msrb.mxu1 %v3764_v13  ;;  %v3832_v13 = vld [vmem:[#allocation2 + $0x570] sm:$0xff] }
  0x7c   :  { %2333 = vmatpush.bf16.msrb.mxu2 %v3772_v14  ;;  %v3840_v14 = vld [vmem:[#allocation2 + $0x5b0] sm:$0xff] }
  0x7d   :  { %2346 = vmatpush.bf16.msrb.mxu3 %v3780_v15  ;;  %v3848_v15 = vld [vmem:[#allocation2 + $0x5f0] sm:$0xff] }
  0x7e   :  { %2308 = vmatpush.bf16.msrb.mxu0 %v3755_v16  ;;  %v3823_v16 = vld [vmem:[#allocation2 + $0x528] sm:$0xff] }
  0x7f   :  { %2321 = vmatpush.bf16.msrb.mxu1 %v3763_v17  ;;  %v3831_v17 = vld [vmem:[#allocation2 + $0x568] sm:$0xff] }
  0x80   :  { %2334 = vmatpush.bf16.msrb.mxu2 %v3771_v18  ;;  %v3920_v18 = vld [vmem:[%s4094_s2] ss:$0 sm:$0xff] }
  0x81   :  { %2347 = vmatpush.bf16.msrb.mxu3 %v3779_v19  ;;  %v3839_v19 = vld [vmem:[#allocation2 + $0x5a8] sm:$0xff] }
  0x82   :  { %2309 = vmatpush.bf16.msrb.mxu0 %v3754_v20  ;;  %v3847_v20 = vld [vmem:[#allocation2 + $0x5e8] sm:$0xff] }
  0x83   :  { %2322 = vmatpush.bf16.msrb.mxu1 %v3762_v21 }
  0x84   :  { %2335 = vmatpush.bf16.msrb.mxu2 %v3770_v22  ;;  %v3822_v22 = vld [vmem:[#allocation2 + $0x520] sm:$0xff] }
  0x85   :  { %2348 = vmatpush.bf16.msrb.mxu3 %v3778_v23  ;;  %2310 = vmatmul.bf16.vlgmr.msrb.gmra.mxu0 %v74_v32  ;;  %v3830_v23 = vld [vmem:[#allocation2 + $0x560] sm:$0xff]  ;;  %v3845_v32 = vld [vmem:[#allocation2 + $0x5d8] sm:$0xff] }
  0x86   :  { %2354 = vmatpush.bf16.msra.mxu0 %v3793_v24  ;;  %2323 = vmatmul.bf16.vlgmr.msrb.gmra.mxu1 %v75_v34 }
  0x87   :  { %2367 = vmatpush.bf16.msra.mxu1 %v3801_v27  ;;  %2336 = vmatmul.bf16.vlgmr.msrb.gmra.mxu2 %v76_v33  ;;  %v3846_v27 = vld [vmem:[#allocation2 + $0x5e0] sm:$0xff] }
  0x88   :  { %2380 = vmatpush.bf16.msra.mxu2 %v3809_v30  ;;  %2349 = vmatmul.bf16.vlgmr.msrb.gmra.mxu3 %v77_v35  ;;  %v3829_v30 = vld [vmem:[#allocation2 + $0x558] sm:$0xff] }
  0x89   :  { %2393 = vmatpush.bf16.msra.mxu3 %v3817_v31  ;;  %v3837_v31 = vld [vmem:[#allocation2 + $0x598] sm:$0xff] }
  0x8a   :  { %2355 = vmatpush.bf16.msra.mxu0 %v3792_v36 }
  0x8b   :  { %2368 = vmatpush.bf16.msra.mxu1 %v3800_v37  ;;  %v3820_v37 = vld [vmem:[#allocation2 + $0x510] sm:$0xff] }
  0x8c   :  { %2381 = vmatpush.bf16.msra.mxu2 %v3808_v38  ;;  %v3828_v38 = vld [vmem:[#allocation2 + $0x550] sm:$0xff] }
  0x8d   :  { %2394 = vmatpush.bf16.msra.mxu3 %v3816_v39 }
  0x8e   :  { %2356 = vmatpush.bf16.msra.mxu0 %v3791_v40 }
  0x8f   :  { %2369 = vmatpush.bf16.msra.mxu1 %v3799_v41  ;;  %v3836_v41 = vld [vmem:[#allocation2 + $0x590] sm:$0xff] }
  0x90   :  { %2382 = vmatpush.bf16.msra.mxu2 %v3807_v42  ;;  %v3844_v42 = vld [vmem:[#allocation2 + $0x5d0] sm:$0xff] }
  0x91   :  { %2395 = vmatpush.bf16.msra.mxu3 %v3815_v43  ;;  %v3819_v43 = vld [vmem:[#allocation2 + $0x508] sm:$0xff] }
  0x92   :  { %2357 = vmatpush.bf16.msra.mxu0 %v3790_v44  ;;  %v3827_v44 = vld [vmem:[#allocation2 + $0x548] sm:$0xff] }
  0x93   :  { %2370 = vmatpush.bf16.msra.mxu1 %v3798_v45  ;;  %v3835_v45 = vld [vmem:[#allocation2 + $0x588] sm:$0xff] }
  0x94   :  { %2383 = vmatpush.bf16.msra.mxu2 %v3806_v46  ;;  %v3843_v46 = vld [vmem:[#allocation2 + $0x5c8] sm:$0xff] }
  0x95   :  { %2396 = vmatpush.bf16.msra.mxu3 %v3814_v47 }
  0x96   :  { %2358 = vmatpush.bf16.msra.mxu0 %v3789_v48 }
  0x97   :  { %2371 = vmatpush.bf16.msra.mxu1 %v3797_v49  ;;  %v3818_v49 = vld [vmem:[#allocation2 + $0x500] sm:$0xff] }
  0x98   :  { %2384 = vmatpush.bf16.msra.mxu2 %v3805_v50  ;;  %v3826_v50 = vld [vmem:[#allocation2 + $0x540] sm:$0xff] }
  0x99   :  { %2397 = vmatpush.bf16.msra.mxu3 %v3813_v51  ;;  %v3834_v51 = vld [vmem:[#allocation2 + $0x580] sm:$0xff] }
  0x9a   :  { %2359 = vmatpush.bf16.msra.mxu0 %v3788_v52  ;;  %v3842_v52 = vld [vmem:[#allocation2 + $0x5c0] sm:$0xff] }
  0x9b   :  { %2372 = vmatpush.bf16.msra.mxu1 %v3796_v53  ;;  %v3857_v53 = vld [vmem:[#allocation2 + $0x638] sm:$0xff] }
  0x9c   :  { %2385 = vmatpush.bf16.msra.mxu2 %v3804_v54  ;;  %v50_v54 = vld [vmem:[%s4092_s0 + $0xa0] sm:$0xff] }
  0x9d   :  { %2398 = vmatpush.bf16.msra.mxu3 %v3812_v55  ;;  %v52_v55 = vld [vmem:[%s4092_s0 + $0xb0] sm:$0xff] }
  0x9e   :  { %2360 = vmatpush.bf16.msra.mxu0 %v3787_v56  ;;  %v3865_v56 = vld [vmem:[#allocation2 + $0x678] sm:$0xff] }
  0x9f   :  { %2373 = vmatpush.bf16.msra.mxu1 %v3795_v57  ;;  %v51_v57 = vld [vmem:[%s4092_s0 + $0xa8] sm:$0xff] }
  0xa0   :  { %2386 = vmatpush.bf16.msra.mxu2 %v3803_v58  ;;  %v53_v58 = vld [vmem:[%s4092_s0 + $0xb8] sm:$0xff] }
  0xa1   :  { %2399 = vmatpush.bf16.msra.mxu3 %v3811_v59  ;;  %v3873_v59 = vld [vmem:[#allocation2 + $0x6b8] sm:$0xff] }
  0xa2   :  { %2361 = vmatpush.bf16.msra.mxu0 %v3786_v60  ;;  %v2155_v21 = vpop.f32.mrf.mxu0  ;;  %v3881_v60 = vld [vmem:[#allocation2 + $0x6f8] sm:$0xff] }
  0xa3   :  { %2374 = vmatpush.bf16.msra.mxu1 %v3794_v61  ;;  %v2156_v24 = vadd.f32 %v3920_v18, %v2155_v21  ;;  %v2168_v25 = vpop.f32.mrf.mxu1  ;;  %v82_v61 = vpack.c.bf16 %v50_v54, %v50_v54  ;;  %v3861_v18 = vld [vmem:[#allocation2 + $0x658] sm:$0xff]  ;;  %v3896_v54 = vld [vmem:[#allocation2 + $0x770] sm:$0xff] }
  0xa4   :  { %2387 = vmatpush.bf16.msra.mxu2 %v3802_v62  ;;  %v84_v62 = vpack.c.bf16 %v52_v55, %v52_v55  ;;  %v3904_v55 = vld [vmem:[#allocation2 + $0x7b0] sm:$0xff] }
  0xa5   :  { %2400 = vmatpush.bf16.msra.mxu3 %v3810_v63  ;;  %2362 = vmatmul.bf16.vlgmr.msra.gmra.mxu0 %v78_v8  ;;  %v2169_v28 = vadd.f32 %v2168_v25, %v2156_v24  ;;  %v83_v63 = vpack.c.bf16 %v51_v57, %v51_v57  ;;  %v3879_v8 = vld [vmem:[#allocation2 + $0x6e8] sm:$0xff]  ;;  %v3852_v25 = vld [vmem:[#allocation2 + $0x610] sm:$0xff] }
  0xa6   :  { %2406 = vmatpush.bf16.msrb.mxu0 %v3825_v0  ;;  %2375 = vmatmul.bf16.vlgmr.msra.gmra.mxu1 %v79_v10  ;;  %v85_v0 = vpack.c.bf16 %v53_v58, %v53_v58  ;;  %v3854_v10 = vld [vmem:[#allocation2 + $0x620] sm:$0xff]  ;;  %v3887_v57 = vld [vmem:[#allocation2 + $0x728] sm:$0xff] }
  0xa7   :  { %2419 = vmatpush.bf16.msrb.mxu1 %v3833_v3  ;;  %2388 = vmatmul.bf16.vlgmr.msra.gmra.mxu2 %v80_v9  ;;  %v3872_v3 = vld [vmem:[#allocation2 + $0x6b0] sm:$0xff]  ;;  %v3895_v58 = vld [vmem:[#allocation2 + $0x768] sm:$0xff] }
  0xa8   :  { %2432 = vmatpush.bf16.msrb.mxu2 %v3841_v6  ;;  %2401 = vmatmul.bf16.vlgmr.msra.gmra.mxu3 %v81_v11  ;;  %v3863_v6 = vld [vmem:[#allocation2 + $0x668] sm:$0xff]  ;;  %v3862_v11 = vld [vmem:[#allocation2 + $0x660] sm:$0xff] }
  0xa9   :  { %2445 = vmatpush.bf16.msrb.mxu3 %v3849_v7  ;;  %v3871_v7 = vld [vmem:[#allocation2 + $0x6a8] sm:$0xff] }
  0xaa   :  { %2407 = vmatpush.bf16.msrb.mxu0 %v3824_v12  ;;  %v2181_v33 = vpop.f32.mrf.mxu2  ;;  %v2157_v36 = vpop.f32.mrf.mxu0 }
  0xab   :  { %2420 = vmatpush.bf16.msrb.mxu1 %v3832_v13  ;;  %v2182_v34 = vadd.f32 %v2181_v33, %v2169_v28  ;;  %v2194_v35 = vpop.f32.mrf.mxu3  ;;  %v2170_v40 = vpop.f32.mrf.mxu1  ;;  %v3867_v33 = vld [vmem:[#allocation2 + $0x688] sm:$0xff] }
  0xac   :  { %2433 = vmatpush.bf16.msrb.mxu2 %v3840_v14  ;;  %v3870_v14 = vld [vmem:[#allocation2 + $0x6a0] sm:$0xff] }
  0xad   :  { %2446 = vmatpush.bf16.msrb.mxu3 %v3848_v15  ;;  %v4047_v39 = vadd.f32 %v2194_v35, %v2182_v34  ;;  %v3878_v15 = vld [vmem:[#allocation2 + $0x6e0] sm:$0xff]  ;;  %v3875_v34 = vld [vmem:[#allocation2 + $0x6c8] sm:$0xff] }
  0xae   :  { %2408 = vmatpush.bf16.msrb.mxu0 %v3823_v16  ;;  %v3874_v40 = vld [vmem:[#allocation2 + $0x6c0] sm:$0xff] }
  0xaf   :  { %2421 = vmatpush.bf16.msrb.mxu1 %v3831_v17  ;;  %v3853_v17 = vld [vmem:[#allocation2 + $0x618] sm:$0xff] }
  0xb0   :  { %2434 = vmatpush.bf16.msrb.mxu2 %v3839_v19  ;;  %v3869_v19 = vld [vmem:[#allocation2 + $0x698] sm:$0xff] }
  0xb1   :  { %2447 = vmatpush.bf16.msrb.mxu3 %v3847_v20  ;;  %v3877_v20 = vld [vmem:[#allocation2 + $0x6d8] sm:$0xff] }
  0xb2   :  { %2409 = vmatpush.bf16.msrb.mxu0 %v3822_v22  ;;  %v2183_v47 = vpop.f32.mrf.mxu2 }
  0xb3   :  { %2422 = vmatpush.bf16.msrb.mxu1 %v3830_v23  ;;  %v2196_v48 = vpop.f32.mrf.mxu3  ;;  %v3905_v47 = vld [vmem:[#allocation2 + $0x7b8] sm:$0xff] }
  0xb4   :  { %2435 = vmatpush.bf16.msrb.mxu2 %v3838_v26  ;;  %v3860_v26 = vld [vmem:[#allocation2 + $0x650] sm:$0xff]  ;;  %v3913_v48 = vld [vmem:[#allocation2 + $0x7f8] sm:$0xff] }
  0xb5   :  { %2448 = vmatpush.bf16.msrb.mxu3 %v3846_v27 }
  0xb6   :  { %2410 = vmatpush.bf16.msrb.mxu0 %v3821_v29  ;;  %v3868_v29 = vld [vmem:[#allocation2 + $0x690] sm:$0xff] }
  0xb7   :  { %2423 = vmatpush.bf16.msrb.mxu1 %v3829_v30  ;;  %v3876_v30 = vld [vmem:[#allocation2 + $0x6d0] sm:$0xff] }
  0xb8   :  { %2436 = vmatpush.bf16.msrb.mxu2 %v3837_v31  ;;  %v3851_v31 = vld [vmem:[#allocation2 + $0x608] sm:$0xff] }
  0xb9   :  { %2449 = vmatpush.bf16.msrb.mxu3 %v3845_v32  ;;  %v3859_v32 = vld [vmem:[#allocation2 + $0x648] sm:$0xff] }
  0xba   :  { %2411 = vmatpush.bf16.msrb.mxu0 %v3820_v37  ;;  %v3850_v37 = vld [vmem:[#allocation2 + $0x600] sm:$0xff] }
  0xbb   :  { %2424 = vmatpush.bf16.msrb.mxu1 %v3828_v38  ;;  %v3858_v38 = vld [vmem:[#allocation2 + $0x640] sm:$0xff] }
  0xbc   :  { %2437 = vmatpush.bf16.msrb.mxu2 %v3836_v41  ;;  %v3889_v41 = vld [vmem:[#allocation2 + $0x738] sm:$0xff] }
  0xbd   :  { %2450 = vmatpush.bf16.msrb.mxu3 %v3844_v42  ;;  %v54_v42 = vld [vmem:[%s4092_s0 + $0xc0] sm:$0xff] }
  0xbe   :  { %2412 = vmatpush.bf16.msrb.mxu0 %v3819_v43  ;;  %v56_v43 = vld [vmem:[%s4092_s0 + $0xd0] sm:$0xff] }
  0xbf   :  { %2425 = vmatpush.bf16.msrb.mxu1 %v3827_v44  ;;  %v3897_v44 = vld [vmem:[#allocation2 + $0x778] sm:$0xff] }
  0xc0   :  { %2438 = vmatpush.bf16.msrb.mxu2 %v3835_v45  ;;  %v55_v45 = vld [vmem:[%s4092_s0 + $0xc8] sm:$0xff] }
  0xc1   :  { %2451 = vmatpush.bf16.msrb.mxu3 %v3843_v46  ;;  %v57_v46 = vld [vmem:[%s4092_s0 + $0xd8] sm:$0xff] }
  0xc2   :  { %2413 = vmatpush.bf16.msrb.mxu0 %v3818_v49  ;;  %v2207_v9 = vpop.f32.mrf.mxu0  ;;  %v86_v49 = vpack.c.bf16 %v54_v42, %v54_v42 }
  0xc3   :  { %2426 = vmatpush.bf16.msrb.mxu1 %v3826_v50  ;;  %v2208_v12 = vadd.f32 %v2207_v9, %v4047_v39  ;;  %v2220_v13 = vpop.f32.mrf.mxu1  ;;  %v3866_v39 = vld [vmem:[#allocation2 + $0x680] sm:$0xff]  ;;  %v88_v50 = vpack.c.bf16 %v56_v43, %v56_v43 }
  0xc4   :  { %2439 = vmatpush.bf16.msrb.mxu2 %v3834_v51  ;;  %v87_v51 = vpack.c.bf16 %v55_v45, %v55_v45 }
  0xc5   :  { %2452 = vmatpush.bf16.msrb.mxu3 %v3842_v52  ;;  %2414 = vmatmul.bf16.vlgmr.msrb.gmra.mxu0 %v82_v61  ;;  %v2221_v16 = vadd.f32 %v2220_v13, %v2208_v12  ;;  %v89_v52 = vpack.c.bf16 %v57_v46, %v57_v46 }
  0xc6   :  { %2458 = vmatpush.bf16.msra.mxu0 %v3857_v53  ;;  %2427 = vmatmul.bf16.vlgmr.msrb.gmra.mxu1 %v83_v63  ;;  %v3888_v53 = vld [vmem:[#allocation2 + $0x730] sm:$0xff]  ;;  %v3886_v63 = vld [vmem:[#allocation2 + $0x720] sm:$0xff] }
  0xc7   :  { %2471 = vmatpush.bf16.msra.mxu1 %v3865_v56  ;;  %2440 = vmatmul.bf16.vlgmr.msrb.gmra.mxu2 %v84_v62  ;;  %v3912_v56 = vld [vmem:[#allocation2 + $0x7f0] sm:$0xff] }
  0xc8   :  { %2484 = vmatpush.bf16.msra.mxu2 %v3873_v59  ;;  %2453 = vmatmul.bf16.vlgmr.msrb.gmra.mxu3 %v85_v0  ;;  %v3903_v59 = vld [vmem:[#allocation2 + $0x7a8] sm:$0xff]  ;;  %v3894_v0 = vld [vmem:[#allocation2 + $0x760] sm:$0xff] }
  0xc9   :  { %2497 = vmatpush.bf16.msra.mxu3 %v3881_v60  ;;  %v3911_v60 = vld [vmem:[#allocation2 + $0x7e8] sm:$0xff] }
  0xca   :  { %2459 = vmatpush.bf16.msra.mxu0 %v3856_v1  ;;  %v2233_v21 = vpop.f32.mrf.mxu2  ;;  %v2209_v24 = vpop.f32.mrf.mxu0 }
  0xcb   :  { %2472 = vmatpush.bf16.msra.mxu1 %v3864_v2  ;;  %v2234_v22 = vadd.f32 %v2233_v21, %v2221_v16  ;;  %v2246_v23 = vpop.f32.mrf.mxu3  ;;  %v2222_v28 = vpop.f32.mrf.mxu1  ;;  %v3902_v2 = vld [vmem:[#allocation2 + $0x7a0] sm:$0xff]  ;;  %v3899_v21 = vld [vmem:[#allocation2 + $0x788] sm:$0xff] }
  0xcc   :  { %2485 = vmatpush.bf16.msra.mxu2 %v3872_v3  ;;  %v3910_v3 = vld [vmem:[#allocation2 + $0x7e0] sm:$0xff] }
  0xcd   :  { %2498 = vmatpush.bf16.msra.mxu3 %v3880_v4  ;;  %v4062_v27 = vadd.f32 %v2246_v23, %v2234_v22  ;;  %v3907_v22 = vld [vmem:[#allocation2 + $0x7c8] sm:$0xff]  ;;  %v58_v28 = vld [vmem:[%s4092_s0 + $0xe0] sm:$0xff] }
  0xce   :  { %2460 = vmatpush.bf16.msra.mxu0 %v3855_v5  ;;  %v3885_v5 = vld [vmem:[#allocation2 + $0x718] sm:$0xff] }
  0xcf   :  { %2473 = vmatpush.bf16.msra.mxu1 %v3863_v6  ;;  %v3893_v6 = vld [vmem:[#allocation2 + $0x758] sm:$0xff] }
  0xd0   :  { %2486 = vmatpush.bf16.msra.mxu2 %v3871_v7  ;;  %v3901_v7 = vld [vmem:[#allocation2 + $0x798] sm:$0xff] }
  0xd1   :  { %2499 = vmatpush.bf16.msra.mxu3 %v3879_v8  ;;  %v3909_v8 = vld [vmem:[#allocation2 + $0x7d8] sm:$0xff] }
  0xd2   :  { %2461 = vmatpush.bf16.msra.mxu0 %v3854_v10  ;;  %v2235_v35 = vpop.f32.mrf.mxu2 }
  0xd3   :  { %2474 = vmatpush.bf16.msra.mxu1 %v3862_v11  ;;  %v2248_v36 = vpop.f32.mrf.mxu3 }
  0xd4   :  { %2487 = vmatpush.bf16.msra.mxu2 %v3870_v14  ;;  %v3884_v14 = vld [vmem:[#allocation2 + $0x710] sm:$0xff] }
  0xd5   :  { %2500 = vmatpush.bf16.msra.mxu3 %v3878_v15  ;;  %v3892_v15 = vld [vmem:[#allocation2 + $0x750] sm:$0xff] }
  0xd6   :  { %2462 = vmatpush.bf16.msra.mxu0 %v3853_v17  ;;  %v3900_v17 = vld [vmem:[#allocation2 + $0x790] sm:$0xff] }
  0xd7   :  { %2475 = vmatpush.bf16.msra.mxu1 %v3861_v18  ;;  %v3908_v18 = vld [vmem:[#allocation2 + $0x7d0] sm:$0xff] }
  0xd8   :  { %2488 = vmatpush.bf16.msra.mxu2 %v3869_v19  ;;  %v3883_v19 = vld [vmem:[#allocation2 + $0x708] sm:$0xff] }
  0xd9   :  { %2501 = vmatpush.bf16.msra.mxu3 %v3877_v20  ;;  %v3891_v20 = vld [vmem:[#allocation2 + $0x748] sm:$0xff] }
  0xda   :  { %2463 = vmatpush.bf16.msra.mxu0 %v3852_v25  ;;  %v3882_v25 = vld [vmem:[#allocation2 + $0x700] sm:$0xff] }
  0xdb   :  { %2476 = vmatpush.bf16.msra.mxu1 %v3860_v26  ;;  %v3890_v26 = vld [vmem:[#allocation2 + $0x740] sm:$0xff] }
  0xdc   :  { %2489 = vmatpush.bf16.msra.mxu2 %v3868_v29  ;;  %v59_v29 = vld [vmem:[%s4092_s0 + $0xe8] sm:$0xff] }
  0xdd   :  { %2502 = vmatpush.bf16.msra.mxu3 %v3876_v30  ;;  %v3906_v30 = vld [vmem:[#allocation2 + $0x7c0] sm:$0xff] }
  0xde   :  { %2464 = vmatpush.bf16.msra.mxu0 %v3851_v31  ;;  %v60_v31 = vld [vmem:[%s4092_s0 + $0xf0] sm:$0xff] }
  0xdf   :  { %2477 = vmatpush.bf16.msra.mxu1 %v3859_v32  ;;  %v61_v32 = vld [vmem:[%s4092_s0 + $0xf8] sm:$0xff]  ;;  %v92_v35 = vpack.c.bf16 %v60_v31, %v60_v31  ;;  %s3958_s0 = smov 1  }
  0xe0   :  { %2490 = vmatpush.bf16.msra.mxu2 %v3867_v33  ;;  %v90_v33 = vpack.c.bf16 %v58_v28, %v58_v28  ;;  %v93_v36 = vpack.c.bf16 %v61_v32, %v61_v32 }
  0xe1   :  { %2503 = vmatpush.bf16.msra.mxu3 %v3875_v34  ;;  %v91_v34 = vpack.c.bf16 %v59_v29, %v59_v29 }
  0xe2   :  { %2465 = vmatpush.bf16.msra.mxu0 %v3850_v37  ;;  %v2259_v61 = vpop.f32.mrf.mxu0 }
  0xe3   :  { %2478 = vmatpush.bf16.msra.mxu1 %v3858_v38  ;;  %v2260_v62 = vadd.f32 %v2259_v61, %v4062_v27  ;;  %v2272_v1 = vpop.f32.mrf.mxu1  ;;  %v3898_v27 = vld [vmem:[#allocation2 + $0x780] sm:$0xff] }
  0xe4   :  { %2491 = vmatpush.bf16.msra.mxu2 %v3866_v39 }
  0xe5   :  { %2504 = vmatpush.bf16.msra.mxu3 %v3874_v40  ;;  %2466 = vmatmul.bf16.vlgmr.msra.gmra.mxu0 %v86_v49  ;;  %v2273_v4 = vadd.f32 %v2272_v1, %v2260_v62 }
  0xe6   :  { %2510 = vmatpush.bf16.msrb.mxu0 %v3889_v41  ;;  %2479 = vmatmul.bf16.vlgmr.msra.gmra.mxu1 %v87_v51 }
  0xe7   :  { %2523 = vmatpush.bf16.msrb.mxu1 %v3897_v44  ;;  %2492 = vmatmul.bf16.vlgmr.msra.gmra.mxu2 %v88_v50 }
  0xe8   :  { %2536 = vmatpush.bf16.msrb.mxu2 %v3905_v47  ;;  %2505 = vmatmul.bf16.vlgmr.msra.gmra.mxu3 %v89_v52 }
  0xe9   :  { %2549 = vmatpush.bf16.msrb.mxu3 %v3913_v48 }
  0xea   :  { %2511 = vmatpush.bf16.msrb.mxu0 %v3888_v53  ;;  %v2285_v9 = vpop.f32.mrf.mxu2  ;;  %v2261_v12 = vpop.f32.mrf.mxu0 }
  0xeb   :  { %2524 = vmatpush.bf16.msrb.mxu1 %v3896_v54  ;;  %v2286_v10 = vadd.f32 %v2285_v9, %v2273_v4  ;;  %v2298_v11 = vpop.f32.mrf.mxu3  ;;  %v2274_v16 = vpop.f32.mrf.mxu1 }
  0xec   :  { %2537 = vmatpush.bf16.msrb.mxu2 %v3904_v55 }
  0xed   :  { %2550 = vmatpush.bf16.msrb.mxu3 %v3912_v56  ;;  %v2299_v13 = vadd.f32 %v2298_v11, %v2286_v10 }
  0xee   :  { %2512 = vmatpush.bf16.msrb.mxu0 %v3887_v57 }
  0xef   :  { %2525 = vmatpush.bf16.msrb.mxu1 %v3895_v58 }
  0xf0   :  { %2538 = vmatpush.bf16.msrb.mxu2 %v3903_v59 }
  0xf1   :  { %2551 = vmatpush.bf16.msrb.mxu3 %v3911_v60 }
  0xf2   :  { %2513 = vmatpush.bf16.msrb.mxu0 %v3886_v63  ;;  %v2287_v23 = vpop.f32.mrf.mxu2 }
  0xf3   :  { %2526 = vmatpush.bf16.msrb.mxu1 %v3894_v0  ;;  %v2300_v24 = vpop.f32.mrf.mxu3 }
  0xf4   :  { %2539 = vmatpush.bf16.msrb.mxu2 %v3902_v2 }
  0xf5   :  { %2552 = vmatpush.bf16.msrb.mxu3 %v3910_v3 }
  0xf6   :  { %2514 = vmatpush.bf16.msrb.mxu0 %v3885_v5 }
  0xf7   :  { %2527 = vmatpush.bf16.msrb.mxu1 %v3893_v6 }
  0xf8   :  { %2540 = vmatpush.bf16.msrb.mxu2 %v3901_v7 }
  0xf9   :  { %2553 = vmatpush.bf16.msrb.mxu3 %v3909_v8 }
  0xfa   :  { %2515 = vmatpush.bf16.msrb.mxu0 %v3884_v14 }
  0xfb   :  { %2528 = vmatpush.bf16.msrb.mxu1 %v3892_v15 }
  0xfc   :  { %2541 = vmatpush.bf16.msrb.mxu2 %v3900_v17 }
  0xfd   :  { %2554 = vmatpush.bf16.msrb.mxu3 %v3908_v18 }
  0xfe   :  { %2516 = vmatpush.bf16.msrb.mxu0 %v3883_v19 }
  0xff   :  { %2529 = vmatpush.bf16.msrb.mxu1 %v3891_v20 }
 0x100   :  { %2542 = vmatpush.bf16.msrb.mxu2 %v3899_v21 }
 0x101   :  { %2555 = vmatpush.bf16.msrb.mxu3 %v3907_v22 }
 0x102   :  { %2517 = vmatpush.bf16.msrb.mxu0 %v3882_v25  ;;  %v2311_v37 = vpop.f32.mrf.mxu0 }
 0x103   :  { %2530 = vmatpush.bf16.msrb.mxu1 %v3890_v26  ;;  %v2312_v38 = vadd.f32 %v2311_v37, %v2299_v13  ;;  %v2324_v39 = vpop.f32.mrf.mxu1 }
 0x104   :  { %2543 = vmatpush.bf16.msrb.mxu2 %v3898_v27 }
 0x105   :  { %2556 = vmatpush.bf16.msrb.mxu3 %v3906_v30  ;;  %2518 = vmatmul.bf16.vlgmr.msrb.gmra.mxu0 %v90_v33  ;;  %v2325_v40 = vadd.f32 %v2324_v39, %v2312_v38 }
 0x106   :  { %2531 = vmatmul.bf16.vlgmr.msrb.gmra.mxu1 %v91_v34 }
 0x107   :  { %2544 = vmatmul.bf16.vlgmr.msrb.gmra.mxu2 %v92_v35 }
 0x108   :  { %2557 = vmatmul.bf16.vlgmr.msrb.gmra.mxu3 %v93_v36 }
 0x10a   :  { %v2337_v41 = vpop.f32.mrf.mxu2  ;;  %v2313_v44 = vpop.f32.mrf.mxu0 }
 0x10b   :  { %v2338_v42 = vadd.f32 %v2337_v41, %v2325_v40  ;;  %v2350_v43 = vpop.f32.mrf.mxu3  ;;  %v2326_v46 = vpop.f32.mrf.mxu1 }
 0x10d   :  { %v2351_v45 = vadd.f32 %v2350_v43, %v2338_v42 }
 0x112   :  { %v2339_v47 = vpop.f32.mrf.mxu2 }
 0x113   :  { %v2352_v48 = vpop.f32.mrf.mxu3 }
 0x122   :  { %v2363_v49 = vpop.f32.mrf.mxu0 }
 0x123   :  { %v2364_v50 = vadd.f32 %v2363_v49, %v2351_v45  ;;  %v2376_v51 = vpop.f32.mrf.mxu1 }
 0x125   :  { %v2377_v52 = vadd.f32 %v2376_v51, %v2364_v50 }
 0x12a   :  { %v2389_v53 = vpop.f32.mrf.mxu2  ;;  %v2365_v56 = vpop.f32.mrf.mxu0 }
 0x12b   :  { %v2390_v54 = vadd.f32 %v2389_v53, %v2377_v52  ;;  %v2402_v55 = vpop.f32.mrf.mxu3  ;;  %v2378_v58 = vpop.f32.mrf.mxu1 }
 0x12d   :  { %v2403_v57 = vadd.f32 %v2402_v55, %v2390_v54 }
 0x132   :  { %v2391_v59 = vpop.f32.mrf.mxu2 }
 0x133   :  { %v2404_v60 = vpop.f32.mrf.mxu3 }
 0x142   :  { %v2415_v61 = vpop.f32.mrf.mxu0 }
 0x143   :  { %v2428_v62 = vpop.f32.mrf.mxu1  ;;  %v2416_v8 = vadd.f32 %v2415_v61, %v2403_v57 }
 0x145   :  { %v2429_v12 = vadd.f32 %v2428_v62, %v2416_v8 }
 0x14a   :  { %v2441_v63 = vpop.f32.mrf.mxu2  ;;  %v2417_v1 = vpop.f32.mrf.mxu0 }
 0x14b   :  { %v2454_v0 = vpop.f32.mrf.mxu3  ;;  %v2430_v2 = vpop.f32.mrf.mxu1  ;;  %v2442_v13 = vadd.f32 %v2441_v63, %v2429_v12 }
 0x14d   :  { %v2455_v16 = vadd.f32 %v2454_v0, %v2442_v13 }
 0x152   :  { %v2443_v3 = vpop.f32.mrf.mxu2 }
 0x153   :  { %v2456_v4 = vpop.f32.mrf.mxu3 }
 0x162   :  { %v2467_v5 = vpop.f32.mrf.mxu0 }
 0x163   :  { %v2480_v6 = vpop.f32.mrf.mxu1  ;;  %v2468_v17 = vadd.f32 %v2467_v5, %v2455_v16 }
 0x165   :  { %v2481_v18 = vadd.f32 %v2480_v6, %v2468_v17 }
 0x16a   :  { %v2493_v7 = vpop.f32.mrf.mxu2  ;;  %v2469_v10 = vpop.f32.mrf.mxu0 }
 0x16b   :  { %v2506_v9 = vpop.f32.mrf.mxu3  ;;  %v2482_v11 = vpop.f32.mrf.mxu1  ;;  %v2494_v19 = vadd.f32 %v2493_v7, %v2481_v18 }
 0x16d   :  { %v2507_v20 = vadd.f32 %v2506_v9, %v2494_v19 }
 0x172   :  { %v2495_v14 = vpop.f32.mrf.mxu2 }
 0x173   :  { %v2508_v15 = vpop.f32.mrf.mxu3 }
 0x182   :  { %v2519_v21 = vpop.f32.mrf.mxu0 }
 0x183   :  { %v2532_v22 = vpop.f32.mrf.mxu1  ;;  %v2520_v23 = vadd.f32 %v2519_v21, %v2507_v20 }
 0x185   :  { %v2533_v24 = vadd.f32 %v2532_v22, %v2520_v23 }
 0x18a   :  { %v2545_v25 = vpop.f32.mrf.mxu2  ;;  %v2521_v28 = vpop.f32.mrf.mxu0 }
 0x18b   :  { %v2558_v26 = vpop.f32.mrf.mxu3  ;;  %v2546_v27 = vadd.f32 %v2545_v25, %v2533_v24  ;;  %v2534_v29 = vpop.f32.mrf.mxu1 }
 0x18d   :  { %v2559_v30 = vadd.f32 %v2558_v26, %v2546_v27 }
 0x18f   :  { %v3656_v31 = vmul.f32 -1.442695, %v2559_v30  ;;  %2582 = vrot.lane.b32.xlu0 %v2559_v30, %s3958_s0 }
 0x191   :  { %3921 = vpow2.f32 %v3656_v31 }
 0x192   :  { %v2547_v32 = vpop.f32.mrf.mxu2 }
 0x193   :  { %v2560_v33 = vpop.f32.mrf.mxu3 }
 0x197   :  { %v3922_v34 = vpop.eup %3921 }
 0x198   :  { %v2565_v35 = vadd.f32 1.0, %v3922_v34 }
 0x19a   :  { %3923 = vrcp.f32 %v2565_v35  ;;  %v2577_v39 = vand.u32 2147483648, %v2565_v35  ;;  %v2575_v41 = vand.u32 2147483647, %v2565_v35  ;;  %vm2571_vm1 = vweird.f32 %v2565_v35 }
 0x19c   :  { %v2578_v43 = vor.u32 1.1754944e-38, %v2577_v39  ;;  %vm2576_vm3 = vcmp.eq.f32.partialorder %v2575_v41, 8.507059e+37 }
 0x1a0   :  { %v3924_v36 = vpop.eup %3923 }
 0x1a1   :  { %v2567_v37 = vmul.f32 %v3924_v36, %v2565_v35  ;;  %vm2572_vm0 = vweird.f32 %v3924_v36 }
 0x1a2   :  { %vm2573_vm2 = vmor %vm2571_vm1, %vm2572_vm0 }
 0x1a3   :  { %v2568_v38 = vsub.f32 1.0, %v2567_v37 }
 0x1a5   :  { %v2569_v40 = vmul.f32 %v3924_v36, %v2568_v38 }
 0x1a7   :  { %v2570_v42 = vadd.f32 %v3924_v36, %v2569_v40 }
 0x1a9   :  { %v2574_v44 = vsel %vm2573_vm2, %v3924_v36, %v2570_v42 }
 0x1aa   :  { %v2579_v45 = vsel %vm2576_vm3, %v2578_v43, %v2574_v44 }
 0x1ab   :  { %2607 = vrot.lane.b32.xlu0 %v2579_v45, %s3959_s27 }
 0x201   :  { %v2583_v46 = vpop.permute.xlu0 %2582 }
 0x202   :  { %v2585_v47 = vsub.f32 %v2559_v30, %v2583_v46 }
 0x204   :  { %v3657_v48 = vmul.f32 -1.442695, %v2585_v47 }
 0x206   :  { %3925 = vpow2.f32 %v3657_v48 }
 0x20c   :  { %v3926_v49 = vpop.eup %3925 }
 0x20d   :  { %v2589_v50 = vadd.f32 1.0, %v3926_v49 }
 0x20f   :  { %3927 = vrcp.f32 %v2589_v50  ;;  %v2601_v54 = vand.u32 2147483648, %v2589_v50  ;;  %v2599_v56 = vand.u32 2147483647, %v2589_v50  ;;  %vm2595_vm5 = vweird.f32 %v2589_v50 }
 0x211   :  { %v2602_v58 = vor.u32 1.1754944e-38, %v2601_v54  ;;  %vm2600_vm7 = vcmp.eq.f32.partialorder %v2599_v56, 8.507059e+37 }
 0x215   :  { %v3928_v51 = vpop.eup %3927 }
 0x216   :  { %v2591_v52 = vmul.f32 %v3928_v51, %v2589_v50  ;;  %vm2596_vm4 = vweird.f32 %v3928_v51 }
 0x217   :  { %vm2597_vm6 = vmor %vm2595_vm5, %vm2596_vm4 }
 0x218   :  { %v2592_v53 = vsub.f32 1.0, %v2591_v52 }
 0x21a   :  { %v2593_v55 = vmul.f32 %v3928_v51, %v2592_v53 }
 0x21c   :  { %v2594_v57 = vadd.f32 %v3928_v51, %v2593_v55 }
 0x21d   :  { %v2608_v63 = vpop.permute.xlu0 %2607 }
 0x21e   :  { %v2598_v59 = vsel %vm2597_vm6, %v3928_v51, %v2594_v57  ;;  %v2619_v0 = vsel %vm2618_vm8, %v2559_v30, %v2608_v63 }
 0x21f   :  { %v2603_v60 = vsel %vm2600_vm7, %v2602_v58, %v2598_v59 }
 0x220   :  { %v2605_v61 = vsub.f32 1.0, %v2603_v60 }
 0x222   :  { %2611 = vrot.lane.b32.xlu1 %v2605_v61, %s3960_s28 }
 0x22a   :  { %2615 = vrot.lane.b32.xlu1 %v2603_v60, %s3959_s27 }
 0x294   :  { %v2612_v62 = vpop.permute.xlu1 %2611 }
 0x295   :  { %v2621_v1 = vsel %vm2620_vm9, %v2619_v0, %v2612_v62 }
 0x29c   :  { %v2616_v2 = vpop.permute.xlu1 %2615 }
 0x29d   :  { %v2623_v3 = vsel %vm2622_vm10, %v2621_v1, %v2616_v2 }
 0x29e   :  { %v2625_v4 = vsel %vm2624_vm11, %v2623_v3, 0.0 }
 0x29f   :  { %2626 = vst [vmem:[%s4095_s3] sm:$0xff] %v2625_v4 }
 0x2a0   :  { %2631 = vsyncpa [#allocation3], 1 }

</bundles_post_ra>
